<compile_context>
chip_gen: v6e
topology: v6e:2x2x1
jax: 0.10.0
libtpu: 0.0.40
codegen_flags: <defaults>
</compile_context>

<pallas_src>
import functools
import math

import jax
import jax.numpy as jnp
from jax import lax
from jax.experimental import pallas as pl
from jax.experimental.pallas import tpu as pltpu


def _round_up(x, m):
    return ((x + m - 1) // m) * m


def _bert_output_kernel(x_ref, w_ref, b_ref, res_ref, g_ref, beta_ref, o_ref, *, eps):
    # x_ref:   (tm, I)  activations (bf16)
    # w_ref:   (H, I)   nn.Linear weight, un-transposed (contract on I)
    # b_ref:   (1, H)   bias, f32
    # res_ref: (tm, H)  residual (input_tensor)
    # g_ref / beta_ref: (1, H) LayerNorm scale / shift, f32
    # o_ref:   (tm, H)
    y = lax.dot_general(
        x_ref[...], w_ref[...],
        dimension_numbers=(((1,), (1,)), ((), ())),   # x @ W^T on the MXU
        preferred_element_type=jnp.float32,
    )
    y = y + b_ref[...]
    # TODO(synk): nn.Dropout omitted — identity at inference; a train-mode mask
    # would need pltpu.prng_seed / prng_random_bits.
    z = y + res_ref[...].astype(jnp.float32)
    mean = jnp.mean(z, axis=-1, keepdims=True)
    zc = z - mean
    var = jnp.mean(zc * zc, axis=-1, keepdims=True)
    inv = lax.rsqrt(var + eps)
    o_ref[...] = (zc * inv * g_ref[...] + beta_ref[...]).astype(o_ref.dtype)


def bert_output_layer(hidden_states, input_tensor, weight, bias, gamma, beta, *,
                      eps=1e-12, tm=256, mxu_dtype=jnp.bfloat16):
    """hidden_states: [B,S,I]; input_tensor: [B,S,H]; weight: [H,I] (nn.Linear layout);
    bias/gamma/beta: [H]."""
    B, S, I = hidden_states.shape
    H = weight.shape[0]
    assert weight.shape == (H, I)
    assert input_tensor.shape == (B, S, H)

    out_dtype = hidden_states.dtype
    M = B * S

    # Large row tile to feed the MXU and amortize per-grid-step overhead;
    # clamp for small problems and pad M to a tile multiple (no M % tm assert).
    tm_eff = min(tm, _round_up(M, 8))
    Mp = _round_up(M, tm_eff)

    x2d = hidden_states.reshape(M, I)
    r2d = input_tensor.reshape(M, H)
    if Mp != M:
        x2d = jnp.pad(x2d, ((0, Mp - M), (0, 0)))
        r2d = jnp.pad(r2d, ((0, Mp - M), (0, 0)))

    # bf16 inputs for the MXU (f32 accumulation in-kernel). Weight is passed
    # un-transposed so XLA never materializes a [I,H] copy in HBM per call.
    if mxu_dtype is not None:
        x2d = x2d.astype(mxu_dtype)
        w_in = weight.astype(mxu_dtype)
    else:
        w_in = weight
    b2d = bias.reshape(1, H).astype(jnp.float32)
    g2d = gamma.reshape(1, H).astype(jnp.float32)
    bt2d = beta.reshape(1, H).astype(jnp.float32)

    grid = (Mp // tm_eff,)

    nbytes = lambda a: a.size * a.dtype.itemsize
    out_bytes = Mp * H * jnp.dtype(out_dtype).itemsize
    cost = pl.CostEstimate(
        flops=2 * Mp * I * H + 10 * Mp * H,
        transcendentals=Mp,   # one rsqrt per row
        bytes_accessed=(nbytes(x2d) + nbytes(w_in) + nbytes(r2d)
                        + nbytes(b2d) + nbytes(g2d) + nbytes(bt2d) + out_bytes),
    )

    # Explicit VMEM budget: double-buffered activation/residual/output tiles +
    # resident weight (+ small params), with headroom; clamp to 64 MiB for v7x,
    # floor 32 MiB so real BERT shapes don't fall back to v5e's 16 MiB default.
    itemsz = lambda dt: jnp.dtype(dt).itemsize
    vmem_est = (
        2 * tm_eff * I * itemsz(x2d.dtype)
        + 2 * H * I * itemsz(w_in.dtype)
        + 2 * tm_eff * H * itemsz(r2d.dtype)
        + 2 * tm_eff * H * itemsz(out_dtype)
        + 2 * 3 * H * 4
    )
    vmem_limit = min(max(int(1.5 * vmem_est) + (1 << 20), 32 << 20), 64 << 20)

    out2d = pl.pallas_call(
        functools.partial(_bert_output_kernel, eps=eps),
        out_shape=jax.ShapeDtypeStruct((Mp, H), out_dtype),
        grid_spec=pltpu.PrefetchScalarGridSpec(
            num_scalar_prefetch=0,
            grid=grid,
            in_specs=[
                pl.BlockSpec((tm_eff, I), lambda i: (i, 0)),   # activation row tile
                pl.BlockSpec((H, I), lambda i: (0, 0)),        # full weight, resident
                pl.BlockSpec((1, H), lambda i: (0, 0)),        # bias
                pl.BlockSpec((tm_eff, H), lambda i: (i, 0)),   # residual row tile
                pl.BlockSpec((1, H), lambda i: (0, 0)),        # LayerNorm gamma
                pl.BlockSpec((1, H), lambda i: (0, 0)),        # LayerNorm beta
            ],
            out_specs=pl.BlockSpec((tm_eff, H), lambda i: (i, 0)),
        ),
        compiler_params=pltpu.CompilerParams(
            dimension_semantics=("parallel",),
            vmem_limit_bytes=vmem_limit,
        ),
        cost_estimate=cost,
    )(x2d, w_in, b2d, r2d, g2d, bt2d)

    if Mp != M:
        out2d = out2d[:M]
    return out2d.reshape(B, S, H)


if __name__ == "__main__":
    # Small BertConfig-consistent shapes: hidden_size=32, intermediate_size=128
    batch, seq, hidden, intermediate = 2, 8, 32, 128

    key = jax.random.PRNGKey(0)
    k_x, k_r, k_w, k_b, k_g, k_bt = jax.random.split(key, 6)

    hidden_states = jax.random.normal(k_x, (batch, seq, intermediate), dtype=jnp.float32)
    input_tensor = jax.random.normal(k_r, (batch, seq, hidden), dtype=jnp.float32)

    # nn.Linear(intermediate -> hidden) params
    bound = 1.0 / math.sqrt(intermediate)
    weight = jax.random.uniform(k_w, (hidden, intermediate),
                                minval=-bound, maxval=bound, dtype=jnp.float32)
    bias = jax.random.uniform(k_b, (hidden,),
                              minval=-bound, maxval=bound, dtype=jnp.float32)
    # LayerNorm params (perturbed from default ones/zeros so they're exercised)
    gamma = 1.0 + 0.1 * jax.random.normal(k_g, (hidden,), dtype=jnp.float32)
    beta = 0.1 * jax.random.normal(k_bt, (hidden,), dtype=jnp.float32)

    out = bert_output_layer(hidden_states, input_tensor, weight, bias, gamma, beta)
    out = jax.block_until_ready(out)

    # pure-JAX f32 reference (dropout = identity in eval mode)
    y = jnp.einsum("bsi,hi->bsh", hidden_states, weight) + bias
    z = y + input_tensor
    mean = z.mean(-1, keepdims=True)
    var = ((z - mean) ** 2).mean(-1, keepdims=True)
    ref = (z - mean) / jnp.sqrt(var + 1e-12) * gamma + beta

    assert out.shape == (batch, seq, hidden)
    err = float(jnp.max(jnp.abs(out - ref)))
    # bf16 MXU inputs vs f32 reference -> loosened tolerance
    assert err < 3e-2, f"max abs err {err}"

    print("KERNEL_OK")
</pallas_src>

<mosaic_0001>
module attributes {stable_mosaic.version = 11 : i64} {
  func.func @_bert_output_kernel(%arg0: i32, %arg1: memref<16x128xbf16, #tpu.memory_space<vmem>>, %arg2: memref<32x128xbf16, #tpu.memory_space<vmem>>, %arg3: memref<1x32xf32, #tpu.memory_space<vmem>>, %arg4: memref<16x32xf32, #tpu.memory_space<vmem>>, %arg5: memref<1x32xf32, #tpu.memory_space<vmem>>, %arg6: memref<1x32xf32, #tpu.memory_space<vmem>>, %arg7: memref<16x32xf32, #tpu.memory_space<vmem>>) attributes {dimension_semantics = [#tpu.dimension_semantics<parallel>], iteration_bounds = array<i64: 1>, scalar_prefetch = 0 : i64, scratch_operands = 0 : i64, tpu.core_type = #tpu.core_type<tc>, window_params = [{transform_indices = @transform_0, window_bounds = array<i64: 16, 128>}, {pipeline_mode = #tpu.pipeline_mode<synchronous>, transform_indices = @transform_1, window_bounds = array<i64: 32, 128>}, {pipeline_mode = #tpu.pipeline_mode<synchronous>, transform_indices = @transform_2, window_bounds = array<i64: 1, 32>}, {transform_indices = @transform_3, window_bounds = array<i64: 16, 32>}, {pipeline_mode = #tpu.pipeline_mode<synchronous>, transform_indices = @transform_4, window_bounds = array<i64: 1, 32>}, {pipeline_mode = #tpu.pipeline_mode<synchronous>, transform_indices = @transform_5, window_bounds = array<i64: 1, 32>}, {transform_indices = @transform_6, window_bounds = array<i64: 16, 32>}]} {
    %c0 = arith.constant 0 : index
    %c0_0 = arith.constant 0 : index
    %0 = vector.load %arg1[%c0, %c0_0] : memref<16x128xbf16, #tpu.memory_space<vmem>>, vector<16x128xbf16>
    %c0_1 = arith.constant 0 : index
    %c0_2 = arith.constant 0 : index
    %1 = vector.load %arg2[%c0_1, %c0_2] : memref<32x128xbf16, #tpu.memory_space<vmem>>, vector<32x128xbf16>
    %cst = arith.constant dense<0.000000e+00> : vector<16x32xf32>
    %2 = tpu.matmul %0, %1, %cst {dimension_numbers = #tpu.dot_dimension_numbers<[1], [1], [0], [0], [0, 0, 1, 0], [], []>} : vector<16x128xbf16>, vector<32x128xbf16>, vector<16x32xf32> -> vector<16x32xf32>
    %c0_3 = arith.constant 0 : index
    %c0_4 = arith.constant 0 : index
    %3 = vector.load %arg3[%c0_3, %c0_4] : memref<1x32xf32, #tpu.memory_space<vmem>>, vector<1x32xf32>
    %4 = vector.broadcast %3 : vector<1x32xf32> to vector<16x32xf32>
    %5 = arith.addf %2, %4 : vector<16x32xf32>
    %c0_5 = arith.constant 0 : index
    %c0_6 = arith.constant 0 : index
    %6 = vector.load %arg4[%c0_5, %c0_6] : memref<16x32xf32, #tpu.memory_space<vmem>>, vector<16x32xf32>
    %7 = arith.addf %5, %6 : vector<16x32xf32>
    %cst_7 = arith.constant dense<0.000000e+00> : vector<16xf32>
    %8 = vector.multi_reduction <add>, %7, %cst_7 [1] : vector<16x32xf32> to vector<16xf32>
    %9 = vector.shape_cast %8 : vector<16xf32> to vector<16x1xf32>
    %cst_8 = arith.constant 3.200000e+01 : f32
    %10 = vector.broadcast %cst_8 : f32 to vector<16x1xf32>
    %11 = arith.divf %9, %10 : vector<16x1xf32>
    %12 = vector.broadcast %11 : vector<16x1xf32> to vector<16x32xf32>
    %13 = arith.subf %7, %12 : vector<16x32xf32>
    %14 = arith.mulf %13, %13 : vector<16x32xf32>
    %cst_9 = arith.constant dense<0.000000e+00> : vector<16xf32>
    %15 = vector.multi_reduction <add>, %14, %cst_9 [1] : vector<16x32xf32> to vector<16xf32>
    %16 = vector.shape_cast %15 : vector<16xf32> to vector<16x1xf32>
    %cst_10 = arith.constant 3.200000e+01 : f32
    %17 = vector.broadcast %cst_10 : f32 to vector<16x1xf32>
    %18 = arith.divf %16, %17 : vector<16x1xf32>
    %cst_11 = arith.constant 9.99999996E-13 : f32
    %19 = vector.broadcast %cst_11 : f32 to vector<16x1xf32>
    %20 = arith.addf %18, %19 : vector<16x1xf32>
    %21 = math.rsqrt %20 : vector<16x1xf32>
    %22 = vector.broadcast %21 : vector<16x1xf32> to vector<16x32xf32>
    %23 = arith.mulf %13, %22 : vector<16x32xf32>
    %c0_12 = arith.constant 0 : index
    %c0_13 = arith.constant 0 : index
    %24 = vector.load %arg5[%c0_12, %c0_13] : memref<1x32xf32, #tpu.memory_space<vmem>>, vector<1x32xf32>
    %25 = vector.broadcast %24 : vector<1x32xf32> to vector<16x32xf32>
    %26 = arith.mulf %23, %25 : vector<16x32xf32>
    %c0_14 = arith.constant 0 : index
    %c0_15 = arith.constant 0 : index
    %27 = vector.load %arg6[%c0_14, %c0_15] : memref<1x32xf32, #tpu.memory_space<vmem>>, vector<1x32xf32>
    %28 = vector.broadcast %27 : vector<1x32xf32> to vector<16x32xf32>
    %29 = arith.addf %26, %28 : vector<16x32xf32>
    %c0_16 = arith.constant 0 : index
    %c0_17 = arith.constant 0 : index
    %30 = vector.load %arg7[%c0_16, %c0_17] : memref<16x32xf32, #tpu.memory_space<vmem>>, vector<16x32xf32>
    tpu.vector_store %arg7[%c0_16, %c0_17], %29 {strides = array<i32>} : memref<16x32xf32, #tpu.memory_space<vmem>>, vector<16x32xf32>,
    return
  }
  func.func @transform_0(%arg0: i32) -> (i32, i32) {
    %c0_i32 = arith.constant 0 : i32
    %c0_i32_0 = arith.constant 0 : i32
    return %arg0, %c0_i32 : i32, i32
  }
  func.func @transform_1(%arg0: i32) -> (i32, i32) {
    %c0_i32 = arith.constant 0 : i32
    %c0_i32_0 = arith.constant 0 : i32
    %c0_i32_1 = arith.constant 0 : i32
    return %c0_i32, %c0_i32_0 : i32, i32
  }
  func.func @transform_2(%arg0: i32) -> (i32, i32) {
    %c0_i32 = arith.constant 0 : i32
    %c0_i32_0 = arith.constant 0 : i32
    %c0_i32_1 = arith.constant 0 : i32
    return %c0_i32, %c0_i32_0 : i32, i32
  }
  func.func @transform_3(%arg0: i32) -> (i32, i32) {
    %c0_i32 = arith.constant 0 : i32
    %c0_i32_0 = arith.constant 0 : i32
    return %arg0, %c0_i32 : i32, i32
  }
  func.func @transform_4(%arg0: i32) -> (i32, i32) {
    %c0_i32 = arith.constant 0 : i32
    %c0_i32_0 = arith.constant 0 : i32
    %c0_i32_1 = arith.constant 0 : i32
    return %c0_i32, %c0_i32_0 : i32, i32
  }
  func.func @transform_5(%arg0: i32) -> (i32, i32) {
    %c0_i32 = arith.constant 0 : i32
    %c0_i32_0 = arith.constant 0 : i32
    %c0_i32_1 = arith.constant 0 : i32
    return %c0_i32, %c0_i32_0 : i32, i32
  }
  func.func @transform_6(%arg0: i32) -> (i32, i32) {
    %c0_i32 = arith.constant 0 : i32
    %c0_i32_0 = arith.constant 0 : i32
    return %arg0, %c0_i32 : i32, i32
  }
}

</mosaic_0001>

<bundles_post_ra>
// kernel: tpu_custom_call.1
= control target key start
LH: loop header
LB: loop body
LE: loop exit
PB: predicated region body
PF: predicated region fallthrough
CT: control target
= control target key end

     0   :  { %11 = vsyncpa [#allocation3], 0  ;;  %s406_s0 = inlined_call_operand.hbm [shape: bf16[16,128], index: 0, kind: input, shape index: {}]   ;;  %s407_s1 = inlined_call_operand.hbm [shape: bf16[32,128], index: 1, kind: input, shape index: {}]   ;;  %s408_s2 = inlined_call_operand.vmem [shape: f32[1,32], index: 2, kind: input, shape index: {}]   ;;  %s409_s3 = inlined_call_operand.hbm [shape: f32[16,32], index: 3, kind: input, shape index: {}]   ;;  %s410_s4 = inlined_call_operand.vmem [shape: f32[1,32], index: 4, kind: input, shape index: {}]   ;;  %s411_s5 = inlined_call_operand.vmem [shape: f32[1,32], index: 5, kind: input, shape index: {}]   ;;  %s412_s6 = inlined_call_operand.hbm [shape: f32[16,32], index: 6, kind: output, shape index: {}]  }
   0x1   :  { %12 = vsyncpa [#allocation6], 0 }
   0x2   :  { %13 = vsyncpa [#allocation4], 0  ;;  %s328_s21 = smov [#allocation5]   ;;  %s329_s23 = smov [#allocation2]  }
   0x3   :  { %s31_s22 = sshll.u32 %s328_s21, 4  ;;  %s19_s24 = sshll.u32 %s329_s23, 4  ;;  %s32_s22 = int_to_ptr.vmem [resolvable:$true] %s31_s22  ;;  %s20_s24 = int_to_ptr.vmem [resolvable:$true] %s19_s24 }
   0x4   :  { %s250_s25 = scalar_lea.vmem %s32_s22, 256  ;;  %p255_p1 = scmp.lt.s32.totalorder %s32_s22, %s32_s22 }
   0x5   :  { %p251_p0 = scmp.ne.s32.totalorder %s32_s22, %s250_s25  ;;  %p256_p2 = scmp.lt.s32.totalorder %s250_s25, %s250_s25 }
   0x7   :  { %p257_p3 = por %p256_p2, %p255_p1 }
   0x9   :  { %p258_p4 = pnand %p257_p3, %p251_p0 }
   0xb   :  { %261 = shalt.err (!%p258_p4)
}
   0xc   :  { %s330_s26 = smov 64   ;;  %s331_s27 = smov 4  }
   0xd   :  { %37 = dma.hbm_to_vmem [thread:$0]  %s407_s1, 256, %s32_s22, [#allocation6], %s330_s26, %s330_s26, %s331_s27  }
   0xe   :  { %s270_s30 = scalar_lea.vmem %s20_s24, 128  ;;  %p275_p6 = scmp.lt.s32.totalorder %s20_s24, %s20_s24 }
   0xf   :  { %p271_p5 = scmp.ne.s32.totalorder %s20_s24, %s270_s30  ;;  %p276_p7 = scmp.lt.s32.totalorder %s270_s30, %s270_s30 }
  0x11   :  { %p277_p8 = por %p276_p7, %p275_p6 }
  0x13   :  { %p278_p9 = pnand %p277_p8, %p271_p5 }
  0x15   :  { %281 = shalt.err (!%p278_p9)
}
  0x16   :  { %25 = dma.hbm_to_vmem [thread:$0]  %s406_s0, 128, %s20_s24, [#allocation3], %s330_s26, %s330_s26, %s331_s27  }
  0x17   :  { %s332_s9 = smov [#allocation7]  }
  0x18   :  { %s45_s10 = sshll.u32 %s332_s9, 4  ;;  %s46_s10 = int_to_ptr.vmem [resolvable:$true] %s45_s10 }
  0x19   :  { %s290_s11 = scalar_lea.vmem %s46_s10, 256  ;;  %p295_p11 = scmp.lt.s32.totalorder %s46_s10, %s46_s10 }
  0x1a   :  { %p291_p10 = scmp.ne.s32.totalorder %s46_s10, %s290_s11  ;;  %p296_p12 = scmp.lt.s32.totalorder %s290_s11, %s290_s11 }
  0x1c   :  { %p297_p13 = por %p296_p12, %p295_p11 }
  0x1e   :  { %p298_p0 = pnand %p297_p13, %p291_p10 }
  0x20   :  { %301 = shalt.err (!%p298_p0)
}
  0x21   :  { %s333_s1 = smov 128   ;;  %s334_s12 = smov 8  }
  0x22   :  { %51 = dma.hbm_to_vmem [thread:$0]  %s409_s3, 256, %s46_s10, [#allocation6], %s333_s1, %s333_s1, %s334_s12  }
  0x23   :  { %322 = dma.done.wait [#allocation3], 128  }
  0x24   :  { %323 = vsyncadd [#allocation3], 4294967168 }
  0x25   :  { %324 = dma.done.wait [#allocation6], 512  }
  0x26   :  { %325 = vsyncadd [#allocation6], 4294966784  ;;  %v335_v0 = vmov 0.0   ;;  %vm336_vm0 = vmmov 0   ;;  %v235_v1 = vld [vmem:[#allocation5 + $0x8] sm:$0xff]   ;;  %v236_v2 = vld [vmem:[#allocation5] sm:$0xff]  }
  0x27   :  { %217 = vmatprep.subr.bf16.mxu0 %v335_v0  ;;  %221 = vmatprep.mubr.msk.bf16.mxu0 %vm336_vm0, %v335_v0  ;;  %v237_v3 = vld [vmem:[#allocation2] sm:$0xff]   ;;  %v138_v6 = vld [vmem:[#allocation7] sm:$0xff]  ;;  %vm142_vm1 = vcmask 261120   ;;  %s337_s18 = smov [#allocation8]  }
  0x28   :  { %218 = vmatpush3.bf16.xpose.msra.mxu0 %v235_v1  ;;  %v208_v4 = vld [vmem:[%s408_s2] ss:$0 sm:$0xff]  ;;  %s195_s19 = sshll.u32 %s337_s18, 4  ;;  %s196_s19 = int_to_ptr.vmem [resolvable:$true] %s195_s19 }
  0x29   :  { %219 = vmatprep.subr.bf16.mxu0 %v335_v0  ;;  %v139_v11 = vld [vmem:[#allocation7 + $0x8] sm:$0xff]  ;;  %s302_s20 = scalar_lea.vmem %s196_s19, 256  ;;  %p307_p2 = scmp.lt.s32.totalorder %s196_s19, %s196_s19 }
  0x2a   :  { %v212_v34 = vld [vmem:[%s410_s4] ss:$0 sm:$0xff]  ;;  %p303_p1 = scmp.ne.s32.totalorder %s196_s19, %s302_s20  ;;  %p308_p3 = scmp.lt.s32.totalorder %s302_s20, %s302_s20 }
  0x2b   :  { %v213_v36 = vld [vmem:[%s411_s5] ss:$0 sm:$0xff] }
  0x2c   :  { %p309_p4 = por %p308_p3, %p307_p2 }
  0x2e   :  { %p310_p5 = pnand %p309_p4, %p303_p1 }
  0x30   :  { %220 = vmatpush3.bf16.xpose.msra.mxu0 %v236_v2 }
  0x37   :  { %222 = vmatmul.mubr.bf16.vlgmr.msra.gmra.mxu0 %v237_v3 }
  0xf7   :  { %v131_v5 = vpop.f32.mrf.mxu0 }
  0xf8   :  { %v132_v7 = vadd.f32 %v208_v4, %v131_v5 }
  0xf9   :  { %v223_v8 = vpop.f32.mrf.mxu0 }
  0xfa   :  { %v140_v9 = vadd.f32 %v138_v6, %v132_v7 }
  0xfb   :  { %v134_v10 = vpop.f32.mrf.mxu0 }
  0xfc   :  { %v135_v12 = vadd.f32 %v208_v4, %v134_v10  ;;  %v143_v13 = vsel %vm142_vm1, %v140_v9, 0.0 }
  0xfd   :  { %144 = vadd.xlane.f32.xlu0 %v143_v13  ;;  %v224_v14 = vpop.f32.mrf.mxu0 }
  0xfe   :  { %v141_v15 = vadd.f32 %v139_v11, %v135_v12 }
 0x100   :  { %v146_v16 = vsel %vm142_vm1, %v141_v15, 0.0 }
 0x101   :  { %147 = vadd.xlane.f32.xlu0 %v146_v16 }
 0x186   :  { %v145_v17 = vpop.xlane.xlu0 %144 }
 0x187   :  { %v150_v18 = vmul.f32 0.03125, %v145_v17 }
 0x189   :  { %v152_v19 = vsub.f32 %v140_v9, %v150_v18 }
 0x18a   :  { %v148_v20 = vpop.xlane.xlu0 %147 }
 0x18b   :  { %v151_v21 = vmul.f32 0.03125, %v148_v20  ;;  %v154_v22 = vmul.f32 %v152_v19, %v152_v19 }
 0x18d   :  { %v153_v23 = vsub.f32 %v141_v15, %v151_v21  ;;  %v156_v24 = vsel %vm142_vm1, %v154_v22, 0.0 }
 0x18e   :  { %157 = vadd.xlane.f32.xlu1 %v156_v24 }
 0x18f   :  { %v155_v25 = vmul.f32 %v153_v23, %v153_v23 }
 0x191   :  { %v159_v26 = vsel %vm142_vm1, %v155_v25, 0.0 }
 0x192   :  { %160 = vadd.xlane.f32.xlu1 %v159_v26 }
 0x217   :  { %v158_v27 = vpop.xlane.xlu1 %157 }
 0x218   :  { %v162_v28 = vmul.f32 0.03125, %v158_v27 }
 0x21a   :  { %v164_v29 = vadd.f32 1e-12, %v162_v28 }
 0x21b   :  { %v161_v30 = vpop.xlane.xlu1 %160 }
 0x21c   :  { %238 = vrsqrt.f32 %v164_v29  ;;  %v163_v31 = vmul.f32 0.03125, %v161_v30 }
 0x21e   :  { %v165_v32 = vadd.f32 1e-12, %v163_v31 }
 0x220   :  { %240 = vrsqrt.f32 %v165_v32 }
 0x229   :  { %v239_v33 = vpop.eup %238 }
 0x22a   :  { %v168_v35 = vmul.f32 %v239_v33, %v152_v19 }
 0x22c   :  { %v177_v37 = vmul.f32 %v212_v34, %v168_v35 }
 0x22d   :  { %v241_v38 = vpop.eup %240 }
 0x22e   :  { %v169_v39 = vmul.f32 %v241_v38, %v153_v23  ;;  %v186_v40 = vadd.f32 %v213_v36, %v177_v37 }
 0x230   :  { %v178_v41 = vmul.f32 %v212_v34, %v169_v39  ;;  %188 = vst.msk [vmem:[#allocation8] sm:$0xff] %vm142_vm1, %v186_v40 }
 0x232   :  { %v187_v42 = vadd.f32 %v213_v36, %v178_v41 }
 0x234   :  { %189 = vst.msk [vmem:[#allocation8 + $0x8] sm:$0xff] %vm142_vm1, %v187_v42 }
 0x235   :  { %313 = shalt.err (!%p310_p5)
}
 0x236   :  { %201 = dma.vmem_to_hbm [thread:$0]  %s196_s19, 256, %s412_s6, [#allocation4], %s333_s1, %s333_s1, %s334_s12  }
 0x237   :  { %326 = dma.done.wait [#allocation4], 256  }
 0x238   :  { %327 = vsyncadd [#allocation4], 4294967040 }
 0x239   :  { %205 = vsyncpa [#allocation3], 1 }
 0x23a   :  { %206 = vsyncpa [#allocation6], 1 }
 0x23b   :  { %207 = vsyncpa [#allocation4], 1 }

</bundles_post_ra>
